<compile_context>
chip_gen: v5e
topology: v5e:2x2
jax: 0.10.0
libtpu: 0.0.40
codegen_flags: <defaults>
</compile_context>

<pallas_src>
import functools

import jax
import jax.numpy as jnp
from jax.experimental import pallas as pl
from jax.experimental.pallas import tpu as pltpu

_EPS = 1e-5
_MIN_GRID_STEPS = 8     # keep >= ~8 grid steps when rows permit (pipelining + v7x megacore)
_MIN_TILE_ROWS = 512    # ... but never shrink tiles below this many packed rows


def _ln_kernel_direct(x_ref, w_ref, o_ref, *, inv_c):
    # x_ref: (T, C), w_ref: (1, C) f32, o_ref: (T, C). C lane-dense (>=128) or full dim.
    x = x_ref[...].astype(jnp.float32)
    ssum = jnp.sum(x, axis=-1, keepdims=True)
    ssq = jnp.sum(x * x, axis=-1, keepdims=True)
    mean = ssum * inv_c
    var = jnp.maximum(ssq * inv_c - mean * mean, 0.0)    # biased variance, one pass, clamped
    inv = jax.lax.rsqrt(var + _EPS)
    o_ref[...] = (x * inv * w_ref[...]).astype(o_ref.dtype)


def _ln_kernel_packed(x_ref, w_ref, s_ref, o_ref, *, inv_c):
    # Packed small-C path: each physical row holds k logical rows (P = k*C = 128).
    # s_ref is a (P, P) block-diagonal ones matrix; x @ s yields, in every lane,
    # the sum over that lane's own C-wide segment (segmented reduce on the MXU).
    x = x_ref[...].astype(jnp.float32)                   # (T, P)
    s = s_ref[...]                                       # (P, P) f32
    seg_sum = jnp.dot(x, s, preferred_element_type=jnp.float32)
    seg_ssq = jnp.dot(x * x, s, preferred_element_type=jnp.float32)
    mean = seg_sum * inv_c
    var = jnp.maximum(seg_ssq * inv_c - mean * mean, 0.0)
    inv = jax.lax.rsqrt(var + _EPS)
    o_ref[...] = (x * inv * w_ref[...]).astype(o_ref.dtype)


def _round_up(a, b):
    return (a + b - 1) // b * b


def _vmem_capacity_bytes():
    try:
        return int(pltpu.get_tpu_info().vmem_capacity_bytes)
    except Exception:
        return 128 * 1024 * 1024


def layernorm_bias_free(x, weight, *,
                        target_block_f32_bytes=None,
                        vmem_limit_bytes=None):
    """x: (..., C), weight: (C,). Returns same shape/dtype as x."""
    # Generation-aware defaults: smaller blocks / limit on 64-MiB-VMEM parts (v7x).
    if target_block_f32_bytes is None or vmem_limit_bytes is None:
        cap = _vmem_capacity_bytes()
        if cap <= 64 * 1024 * 1024:
            tb, vl = 4 * 1024 * 1024, 48 * 1024 * 1024
        else:
            tb, vl = 8 * 1024 * 1024, 96 * 1024 * 1024
        target_block_f32_bytes = target_block_f32_bytes or tb
        vmem_limit_bytes = vmem_limit_bytes or vl

    orig_shape = x.shape
    C = int(orig_shape[-1])
    assert weight.shape == (C,)
    rows = 1
    for d in orig_shape[:-1]:
        rows *= int(d)
    x2 = x.reshape(rows, C)

    itemsize = jnp.dtype(x.dtype).itemsize
    sublane = max(8, 32 // itemsize)          # (8,128) f32, (16,128) bf16, (32,128) 8-bit

    # Lane packing for small C so output stores are full 128-lane wide.
    if C < 128 and 128 % C == 0:
        k = 128 // C
    else:
        k = 1
        # TODO(synk): C<128 that doesn't divide 128 (e.g. 48, 96) still uses masked
        # <128-lane stores; could pack to lcm(C,128) lanes instead of the direct path.
    P = k * C

    # Packed path needs rows % k == 0: pad by at most k-1 rows (never to a tile multiple).
    pad_rows = (-rows) % k
    if pad_rows:
        x2 = jnp.pad(x2, ((0, pad_rows), (0, 0)))
    packed_rows = (rows + pad_rows) // k

    # Row tile: ~target f32 footprint, multiple of the sublane packing; capped so the
    # grid keeps >= _MIN_GRID_STEPS steps (double-buffering + megacore sharding).
    tile_rows = max(sublane, (target_block_f32_bytes // (P * 4)) // sublane * sublane)
    depth_cap = max(_MIN_TILE_ROWS,
                    _round_up(max(1, packed_rows // _MIN_GRID_STEPS), sublane))
    tile_rows = min(tile_rows, depth_cap)
    if tile_rows >= packed_rows:
        tile_rows = packed_rows           # single block == full dim (layout-legal for any size)
    grid = (int(pl.cdiv(packed_rows, tile_rows)),)
    # Edge blocks (packed_rows % tile_rows != 0) are masked by Pallas: OOB reads only feed
    # rows whose writes are dropped, so no row padding / output slicing is required.

    w_f32 = weight.astype(jnp.float32)
    inv_c = 1.0 / float(C)

    cost = pl.CostEstimate(
        flops=7 * rows * C + (4 * packed_rows * P * P if k > 1 else 0),
        transcendentals=rows,
        bytes_accessed=2 * rows * C * itemsize + C * 4,
    )
    cparams = pltpu.CompilerParams(
        dimension_semantics=("parallel",),
        vmem_limit_bytes=vmem_limit_bytes,
    )

    if k == 1:
        kernel = functools.partial(_ln_kernel_direct, inv_c=inv_c)
        out = pl.pallas_call(
            kernel,
            out_shape=jax.ShapeDtypeStruct((packed_rows, P), x.dtype),
            grid_spec=pltpu.PrefetchScalarGridSpec(
                num_scalar_prefetch=0,
                grid=grid,
                in_specs=[
                    pl.BlockSpec((tile_rows, P), lambda i: (i, 0)),
                    pl.BlockSpec((1, P), lambda i: (0, 0)),
                ],
                out_specs=pl.BlockSpec((tile_rows, P), lambda i: (i, 0)),
            ),
            compiler_params=cparams,
            cost_estimate=cost,
        )(x2, w_f32.reshape(1, P))
    else:
        xp = x2.reshape(packed_rows, P)                       # free row-major bitcast
        w_packed = jnp.tile(w_f32, k).reshape(1, P)
        seg = jnp.arange(P) // C
        s_mat = (seg[:, None] == seg[None, :]).astype(jnp.float32)   # (P, P) block-diag ones
        kernel = functools.partial(_ln_kernel_packed, inv_c=inv_c)
        out = pl.pallas_call(
            kernel,
            out_shape=jax.ShapeDtypeStruct((packed_rows, P), x.dtype),
            grid_spec=pltpu.PrefetchScalarGridSpec(
                num_scalar_prefetch=0,
                grid=grid,
                in_specs=[
                    pl.BlockSpec((tile_rows, P), lambda i: (i, 0)),
                    pl.BlockSpec((1, P), lambda i: (0, 0)),
                    pl.BlockSpec((P, P), lambda i: (0, 0)),
                ],
                out_specs=pl.BlockSpec((tile_rows, P), lambda i: (i, 0)),
            ),
            compiler_params=cparams,
            cost_estimate=cost,
        )(xp, w_packed, s_mat)
        out = out.reshape(packed_rows * k, C)                 # free row-major bitcast
        if pad_rows:
            out = out[:rows]

    return out.reshape(orig_shape)


def _reference(x, weight):
    xf = x.astype(jnp.float32)
    sigma = jnp.var(xf, axis=-1, keepdims=True)               # biased (unbiased=False)
    return (xf / jnp.sqrt(sigma + 1e-5) * weight.astype(jnp.float32)).astype(x.dtype)


if __name__ == "__main__":
    key = jax.random.PRNGKey(0)

    # Main demo shape (small C -> exercises the lane-packed path, no pad needed).
    B, N, C = 2, 8, 32
    x = jax.random.normal(key, (B, N, C), dtype=jnp.float32)
    weight = jnp.ones((C,), dtype=jnp.float32)                # nn.Parameter(torch.ones(C))

    out = jax.block_until_ready(layernorm_bias_free(x, weight))
    ref = _reference(x, weight)
    assert out.shape == x.shape and out.dtype == x.dtype
    assert jnp.allclose(out, ref, atol=1e-4, rtol=1e-4), "packed path mismatch vs reference"

    # Lane-dense C (direct path, single block).
    C2 = 128
    x2 = jax.random.normal(jax.random.PRNGKey(1), (B, N, C2), dtype=jnp.float32)
    w2 = jax.random.normal(jax.random.PRNGKey(2), (C2,), dtype=jnp.float32)
    out2 = jax.block_until_ready(layernorm_bias_free(x2, w2))
    assert jnp.allclose(out2, _reference(x2, w2), atol=1e-4, rtol=1e-4), "direct path mismatch"

    # Direct path with multiple grid steps and a masked edge block (600 rows, tile 512).
    x3 = jax.random.normal(jax.random.PRNGKey(3), (2, 300, 256), dtype=jnp.float32)
    w3 = jax.random.normal(jax.random.PRNGKey(4), (256,), dtype=jnp.float32)
    out3 = jax.block_until_ready(layernorm_bias_free(x3, w3))
    assert jnp.allclose(out3, _reference(x3, w3), atol=1e-4, rtol=1e-4), "edge-block mismatch"

    # Packed path where rows % k != 0 (pads only k-1 rows, slices back).
    x4 = jax.random.normal(jax.random.PRNGKey(5), (2, 7, 32), dtype=jnp.float32)
    w4 = jax.random.normal(jax.random.PRNGKey(6), (32,), dtype=jnp.float32)
    out4 = jax.block_until_ready(layernorm_bias_free(x4, w4))
    assert jnp.allclose(out4, _reference(x4, w4), atol=1e-4, rtol=1e-4), "packed pad mismatch"

    print("KERNEL_OK")
</pallas_src>

<mosaic_0001>
module attributes {stable_mosaic.version = 11 : i64} {
  func.func @_ln_kernel_packed(%arg0: i32, %arg1: memref<4x128xf32, #tpu.memory_space<vmem>>, %arg2: memref<1x128xf32, #tpu.memory_space<vmem>>, %arg3: memref<128x128xf32, #tpu.memory_space<vmem>>, %arg4: memref<4x128xf32, #tpu.memory_space<vmem>>) attributes {dimension_semantics = [#tpu.dimension_semantics<parallel>], iteration_bounds = array<i64: 1>, scalar_prefetch = 0 : i64, scratch_operands = 0 : i64, tpu.core_type = #tpu.core_type<tc>, window_params = [{transform_indices = @transform_0, window_bounds = array<i64: 4, 128>}, {pipeline_mode = #tpu.pipeline_mode<synchronous>, transform_indices = @transform_1, window_bounds = array<i64: 1, 128>}, {pipeline_mode = #tpu.pipeline_mode<synchronous>, transform_indices = @transform_2, window_bounds = array<i64: 128, 128>}, {transform_indices = @transform_3, window_bounds = array<i64: 4, 128>}]} {
    %c0 = arith.constant 0 : index
    %c0_0 = arith.constant 0 : index
    %0 = vector.load %arg1[%c0, %c0_0] : memref<4x128xf32, #tpu.memory_space<vmem>>, vector<4x128xf32>
    %c0_1 = arith.constant 0 : index
    %c0_2 = arith.constant 0 : index
    %1 = vector.load %arg3[%c0_1, %c0_2] : memref<128x128xf32, #tpu.memory_space<vmem>>, vector<128x128xf32>
    %cst = arith.constant dense<0.000000e+00> : vector<4x128xf32>
    %2 = tpu.matmul %0, %1, %cst {dimension_numbers = #tpu.dot_dimension_numbers<[1], [0], [0], [1], [0, 0, 1, 1], [], []>} : vector<4x128xf32>, vector<128x128xf32>, vector<4x128xf32> -> vector<4x128xf32>
    %3 = arith.mulf %0, %0 : vector<4x128xf32>
    %cst_3 = arith.constant dense<0.000000e+00> : vector<4x128xf32>
    %4 = tpu.matmul %3, %1, %cst_3 {dimension_numbers = #tpu.dot_dimension_numbers<[1], [0], [0], [1], [0, 0, 1, 1], [], []>} : vector<4x128xf32>, vector<128x128xf32>, vector<4x128xf32> -> vector<4x128xf32>
    %cst_4 = arith.constant 3.125000e-02 : f32
    %5 = vector.broadcast %cst_4 : f32 to vector<4x128xf32>
    %6 = arith.mulf %2, %5 : vector<4x128xf32>
    %cst_5 = arith.constant 3.125000e-02 : f32
    %7 = vector.broadcast %cst_5 : f32 to vector<4x128xf32>
    %8 = arith.mulf %4, %7 : vector<4x128xf32>
    %9 = arith.mulf %6, %6 : vector<4x128xf32>
    %10 = arith.subf %8, %9 : vector<4x128xf32>
    %cst_6 = arith.constant 0.000000e+00 : f32
    %11 = vector.broadcast %cst_6 : f32 to vector<4x128xf32>
    %12 = arith.maximumf %10, %11 : vector<4x128xf32>
    %cst_7 = arith.constant 9.99999974E-6 : f32
    %13 = vector.broadcast %cst_7 : f32 to vector<4x128xf32>
    %14 = arith.addf %12, %13 : vector<4x128xf32>
    %15 = math.rsqrt %14 : vector<4x128xf32>
    %16 = arith.mulf %0, %15 : vector<4x128xf32>
    %c0_8 = arith.constant 0 : index
    %c0_9 = arith.constant 0 : index
    %17 = vector.load %arg2[%c0_8, %c0_9] : memref<1x128xf32, #tpu.memory_space<vmem>>, vector<1x128xf32>
    %18 = vector.broadcast %17 : vector<1x128xf32> to vector<4x128xf32>
    %19 = arith.mulf %16, %18 : vector<4x128xf32>
    %c0_10 = arith.constant 0 : index
    %c0_11 = arith.constant 0 : index
    %20 = vector.load %arg4[%c0_10, %c0_11] : memref<4x128xf32, #tpu.memory_space<vmem>>, vector<4x128xf32>
    tpu.vector_store %arg4[%c0_10, %c0_11], %19 {strides = array<i32>} : memref<4x128xf32, #tpu.memory_space<vmem>>, vector<4x128xf32>,
    return
  }
  func.func @transform_0(%arg0: i32) -> (i32, i32) {
    %c0_i32 = arith.constant 0 : i32
    %c0_i32_0 = arith.constant 0 : i32
    return %arg0, %c0_i32 : i32, i32
  }
  func.func @transform_1(%arg0: i32) -> (i32, i32) {
    %c0_i32 = arith.constant 0 : i32
    %c0_i32_0 = arith.constant 0 : i32
    %c0_i32_1 = arith.constant 0 : i32
    return %c0_i32, %c0_i32_0 : i32, i32
  }
  func.func @transform_2(%arg0: i32) -> (i32, i32) {
    %c0_i32 = arith.constant 0 : i32
    %c0_i32_0 = arith.constant 0 : i32
    %c0_i32_1 = arith.constant 0 : i32
    return %c0_i32, %c0_i32_0 : i32, i32
  }
  func.func @transform_3(%arg0: i32) -> (i32, i32) {
    %c0_i32 = arith.constant 0 : i32
    %c0_i32_0 = arith.constant 0 : i32
    return %arg0, %c0_i32 : i32, i32
  }
}

</mosaic_0001>

<bundles_post_ra>
// kernel: tpu_custom_call.1
= control target key start
LH: loop header
LB: loop body
LE: loop exit
PB: predicated region body
PF: predicated region fallthrough
CT: control target
= control target key end

     0   :  { %8 = vsyncpa [#allocation3], 0  ;;  %s306_s0 = inlined_call_operand.hbm [shape: f32[4,128], index: 0, kind: input, shape index: {}]   ;;  %s307_s1 = inlined_call_operand.hbm [shape: f32[1,128], index: 1, kind: input, shape index: {}]   ;;  %s308_s2 = inlined_call_operand.hbm [shape: f32[128,128], index: 2, kind: input, shape index: {}]   ;;  %s309_s3 = inlined_call_operand.hbm [shape: f32[4,128], index: 3, kind: output, shape index: {}]  }
   0x1   :  { %9 = vsyncpa [#allocation6], 0  ;;  %s27_s14 = sshll.u32 %s307_s1, 4  ;;  %s28_s14 = int_to_ptr.hbm [resolvable:$true] %s27_s14 }
   0x2   :  { %10 = vsyncpa [#allocation4], 0  ;;  %s268_s15 = smov [#allocation5]   ;;  %s16_s19 = sshll.u32 %s306_s0, 4  ;;  %s17_s19 = int_to_ptr.hbm [resolvable:$true] %s16_s19 }
   0x3   :  { %s29_s16 = sshll.u32 %s268_s15, 4  ;;  %s269_s20 = smov [#allocation2]   ;;  %s30_s16 = int_to_ptr.vmem [resolvable:$true] %s29_s16 }
   0x4   :  { %32 = dma.hbm_to_vmem [thread:$0]  %s28_s14, 16, %s30_s16, [#allocation6]  }
   0x5   :  { %s18_s21 = sshll.u32 %s269_s20, 4  ;;  %s37_s24 = sshll.u32 %s308_s2, 4  ;;  %s19_s21 = int_to_ptr.vmem [resolvable:$true] %s18_s21  ;;  %s38_s24 = int_to_ptr.hbm [resolvable:$true] %s37_s24 }
   0x6   :  { %21 = dma.hbm_to_vmem [thread:$0]  %s17_s19, 64, %s19_s21, [#allocation3]  }
   0x7   :  { %s270_s1 = smov [#allocation7]   ;;  %s271_s26 = smov 128  }
   0x8   :  { %s39_s25 = sshll.u32 %s270_s1, 4  ;;  %s272_s27 = smov 8   ;;  %s40_s25 = int_to_ptr.vmem [resolvable:$true] %s39_s25 }
   0x9   :  { %45 = dma.hbm_to_vmem [thread:$0]  %s38_s24, 2048, %s40_s25, [#allocation6], %s271_s26, %s271_s26, %s272_s27  }
   0xa   :  { %262 = dma.done.wait [#allocation3], 64  }
   0xb   :  { %263 = vsyncadd [#allocation3], 4294967232 }
   0xc   :  { %264 = dma.done.wait [#allocation6], 2064  }
   0xd   :  { %265 = vsyncadd [#allocation6], 4294965232  ;;  %v74_v0 = vld [vmem:[#allocation7 + $0x78] sm:$0xff]  ;;  %v73_v1 = vld [vmem:[#allocation7 + $0x70] sm:$0xff]  ;;  %s273_s0 = smov [#allocation8]   ;;  %s146_s30 = sshll.u32 %s309_s3, 4  ;;  %s147_s30 = int_to_ptr.hbm [resolvable:$true] %s146_s30 }
   0xe   :  { %75 = vmatpush.msra.mxu0 %v74_v0  ;;  %96 = vmatpush.msra.mxu1 %v74_v0  ;;  %v72_v2 = vld [vmem:[#allocation7 + $0x68] sm:$0xff]  ;;  %v71_v3 = vld [vmem:[#allocation7 + $0x60] sm:$0xff]  ;;  %v70_v4 = vld [vmem:[#allocation7 + $0x58] sm:$0xff]  ;;  %s144_s2 = sshll.u32 %s273_s0, 4  ;;  %s145_s2 = int_to_ptr.vmem [resolvable:$true] %s144_s2 }
   0xf   :  { %v69_v5 = vld [vmem:[#allocation7 + $0x50] sm:$0xff]  ;;  %v68_v6 = vld [vmem:[#allocation7 + $0x48] sm:$0xff]  ;;  %v67_v7 = vld [vmem:[#allocation7 + $0x40] sm:$0xff] }
  0x10   :  { %76 = vmatpush.msra.mxu0 %v73_v1  ;;  %97 = vmatpush.msra.mxu1 %v73_v1  ;;  %v66_v8 = vld [vmem:[#allocation7 + $0x38] sm:$0xff]  ;;  %v65_v9 = vld [vmem:[#allocation7 + $0x30] sm:$0xff]  ;;  %v64_v10 = vld [vmem:[#allocation7 + $0x28] sm:$0xff] }
  0x11   :  { %v63_v11 = vld [vmem:[#allocation7 + $0x20] sm:$0xff]  ;;  %v62_v12 = vld [vmem:[#allocation7 + $0x18] sm:$0xff]  ;;  %v61_v13 = vld [vmem:[#allocation7 + $0x10] sm:$0xff] }
  0x12   :  { %77 = vmatpush.msra.mxu0 %v72_v2  ;;  %98 = vmatpush.msra.mxu1 %v72_v2  ;;  %v58_v14 = vld [vmem:[#allocation2] sm:$0xf]  ;;  %v60_v15 = vld [vmem:[#allocation7 + $0x8] sm:$0xff]  ;;  %v59_v16 = vld [vmem:[#allocation7] sm:$0xff] }
  0x13   :  { %v95_v17 = vmul.f32 %v58_v14, %v58_v14  ;;  %v163_v32 = vld [vmem:[#allocation5] ss:$0 sm:$0xff] }
  0x14   :  { %78 = vmatpush.msra.mxu0 %v71_v3  ;;  %99 = vmatpush.msra.mxu1 %v71_v3 }
  0x16   :  { %79 = vmatpush.msra.mxu0 %v70_v4  ;;  %100 = vmatpush.msra.mxu1 %v70_v4 }
  0x18   :  { %80 = vmatpush.msra.mxu0 %v69_v5  ;;  %101 = vmatpush.msra.mxu1 %v69_v5 }
  0x1a   :  { %81 = vmatpush.msra.mxu0 %v68_v6  ;;  %102 = vmatpush.msra.mxu1 %v68_v6 }
  0x1c   :  { %82 = vmatpush.msra.mxu0 %v67_v7  ;;  %103 = vmatpush.msra.mxu1 %v67_v7 }
  0x1e   :  { %83 = vmatpush.msra.mxu0 %v66_v8  ;;  %104 = vmatpush.msra.mxu1 %v66_v8 }
  0x20   :  { %84 = vmatpush.msra.mxu0 %v65_v9  ;;  %105 = vmatpush.msra.mxu1 %v65_v9 }
  0x22   :  { %85 = vmatpush.msra.mxu0 %v64_v10  ;;  %106 = vmatpush.msra.mxu1 %v64_v10 }
  0x24   :  { %86 = vmatpush.msra.mxu0 %v63_v11  ;;  %107 = vmatpush.msra.mxu1 %v63_v11 }
  0x26   :  { %87 = vmatpush.msra.mxu0 %v62_v12  ;;  %108 = vmatpush.msra.mxu1 %v62_v12 }
  0x28   :  { %88 = vmatpush.msra.mxu0 %v61_v13  ;;  %109 = vmatpush.msra.mxu1 %v61_v13 }
  0x2a   :  { %89 = vmatpush.msra.mxu0 %v60_v15  ;;  %110 = vmatpush.msra.mxu1 %v60_v15 }
  0x2c   :  { %90 = vmatpush.msra.mxu0 %v59_v16  ;;  %111 = vmatpush.msra.mxu1 %v59_v16 }
  0x2d   :  { %91 = vmatmul.f32.vlgmr.msra.gmra.mxu0 %v58_v14  ;;  %112 = vmatmul.f32.vlgmr.msra.gmra.mxu1 %v95_v17 }
  0xaa   :  { %v92_v18 = vpop.f32.mrf.mxu0  ;;  %v113_v19 = vpop.f32.mrf.mxu1 }
  0xab   :  { %v116_v20 = vmul.f32 0.03125, %v92_v18  ;;  %v117_v21 = vmul.f32 0.03125, %v113_v19 }
  0xad   :  { %v118_v22 = vmul.f32 %v116_v20, %v116_v20 }
  0xaf   :  { %v119_v23 = vsub.f32 %v117_v21, %v118_v22 }
  0xb1   :  { %v120_v24 = vmax.f32 %v119_v23, 0.0 }
  0xb3   :  { %v121_v25 = vadd.f32 1e-05, %v120_v24 }
  0xb5   :  { %164 = vrsqrt.f32 %v121_v25  ;;  %vm128_vm1 = vweird.f32 %v121_v25 }
  0xbb   :  { %v165_v26 = vpop.eup %164 }
  0xbc   :  { %v123_v27 = vmul.f32 %v165_v26, %v121_v25  ;;  %vm129_vm0 = vweird.f32 %v165_v26 }
  0xbd   :  { %vm130_vm2 = vmor %vm128_vm1, %vm129_vm0 }
  0xbe   :  { %v124_v28 = vmul.f32 %v165_v26, %v123_v27 }
  0xc0   :  { %v125_v29 = vmul.f32 0.5, %v124_v28 }
  0xc2   :  { %v126_v30 = vsub.f32 1.5, %v125_v29 }
  0xc4   :  { %v127_v31 = vmul.f32 %v165_v26, %v126_v30 }
  0xc6   :  { %v131_v33 = vsel %vm130_vm2, %v165_v26, %v127_v31 }
  0xc7   :  { %v132_v34 = vmul.f32 %v131_v33, %v58_v14 }
  0xc9   :  { %v137_v35 = vmul.f32 %v163_v32, %v132_v34 }
  0xcb   :  { %138 = vst [vmem:[#allocation8] sm:$0xf] %v137_v35 }
  0xcc   :  { %149 = dma.vmem_to_hbm [thread:$0]  %s145_s2, 64, %s147_s30, [#allocation4]  }
  0xcd   :  { %266 = dma.done.wait [#allocation4], 64  }
  0xce   :  { %267 = vsyncadd [#allocation4], 4294967232 }
  0xcf   :  { %154 = vsyncpa [#allocation3], 1 }
  0xd0   :  { %155 = vsyncpa [#allocation6], 1 }
  0xd1   :  { %156 = vsyncpa [#allocation4], 1 }

</bundles_post_ra>
